<compile_context>
chip_gen: v7x
topology: tpu7x:2x2x1
jax: 0.10.0
libtpu: 0.0.40
codegen_flags: <defaults>
</compile_context>

<pallas_src>
import jax
import jax.numpy as jnp
import numpy as np
from jax.experimental import pallas as pl
from jax.experimental.pallas import tpu as pltpu

# ----- small synthetic config (module: SIZE=2048, d_state=16, d_conv=4) -----
D_MODEL = 32      # "SIZE"
D_STATE = 16      # d_state
D_CONV = 4        # d_conv
SEQ_LEN = 8       # l  (sequence length of the input x)


def _silu(x):
    return x * (1.0 / (1.0 + jnp.exp(-x)))


def _softplus(x):
    # numerically stable softplus using only exp/log/abs/max (Mosaic-friendly)
    return jnp.maximum(x, 0.0) + jnp.log(1.0 + jnp.exp(-jnp.abs(x)))


def _pad_rows(k_taps):
    # left-pad rounded up to a full sublane tile so both scratch stores are
    # 8-row aligned (reads at sub-tile offsets are cheap; stores stay aligned)
    return ((k_taps - 1 + 7) // 8) * 8


def mamba_block_kernel(
    x_ref, sim_t_ref,
    w_in_ref, b_in_ref,
    w_conv_ref, b_conv_ref,
    w_xf_ref, b_xf_ref,
    a_t_ref, d_param_ref,
    w_out_ref, b_out_ref,
    out_ref,
    xpad_ref,
):
    l, d = x_ref.shape
    n = a_t_ref.shape[0]
    k_taps = w_conv_ref.shape[0] // d

    x = x_ref[...]

    # ---------------- fused in_proj: one (l,d)@(d,2d) matmul ----------------
    xr = jnp.dot(x, w_in_ref[...], preferred_element_type=jnp.float32) + b_in_ref[...]
    xi = xr[:, :d]           # conv / ssm branch
    res = xr[:, d:]          # gate branch

    # -------- causal Conv1d: padded VMEM scratch + one stacked matmul -------
    pad = _pad_rows(k_taps)
    xpad_ref[0:pad, :] = jnp.zeros((pad, d), jnp.float32)     # aligned zero store
    xpad_ref[pad:, :] = xi                                    # aligned data store
    base = pad - (k_taps - 1)
    # tap-j view is x_pad[t+j]; concat along lanes -> (l, K*d), one MXU matmul
    shifted = jnp.concatenate(
        [xpad_ref[base + j:base + j + l, :] for j in range(k_taps)], axis=1)
    conv = jnp.dot(shifted, w_conv_ref[...],
                   preferred_element_type=jnp.float32) + b_conv_ref[...]
    u = _silu(conv)                                           # (l, d)

    # ------ fused x_proj + dt_proj: one (l,d)@(d,d+2n) matmul ---------------
    # delta columns already carry W_x_delta @ W_dt (folded at init) and b_dt.
    xdbl = jnp.dot(u, w_xf_ref[...], preferred_element_type=jnp.float32) + b_xf_ref[...]
    delta = _softplus(xdbl[:, :d])                            # (l, d)
    b_mat = xdbl[:, d:d + n]                                  # (l, n)
    c_mat = xdbl[:, d + n:]                                   # (l, n)

    # ----------------- selective scan (state layout: (n, d)) ----------------
    # Bulk-precompute EUP/VPU work off the serial dependency chain.
    a_t = a_t_ref[...]                                        # (n, d) == (-exp(A_log)).T
    d_a = jnp.exp(delta[:, None, :] * a_t[None, :, :])        # (l, n, d)
    d_bu = b_mat[:, :, None] * (delta * u)[:, None, :]        # (l, n, d)
    c_full = jnp.broadcast_to(c_mat[:, :, None], (l, n, d))   # (l, n, d), hoisted

    state = jnp.zeros((n, d), jnp.float32)
    ys = []
    for i in range(l):     # l is small & static -> unrolled; pure VPU/XLU path
        state = d_a[i] * state + d_bu[i]
        ys.append(jnp.sum(c_full[i] * state, axis=0, keepdims=True))   # (1, d)
    y = jnp.concatenate(ys, axis=0)                           # (l, d), built once

    # ---------- result = y @ sim^T (sim pre-transposed) + u * D -------------
    y = jnp.dot(y, sim_t_ref[...], preferred_element_type=jnp.float32)
    y = y + u * d_param_ref[...]

    # ------------------ gate with silu(res) and out_proj --------------------
    y = y * _silu(res)
    out = jnp.dot(y, w_out_ref[...], preferred_element_type=jnp.float32) + b_out_ref[...]
    out_ref[...] = out.astype(out_ref.dtype)


def mamba_block_forward(x, sim, params):
    """x: (l, d) float32, sim: (d, d) float32 (the batch-1 `sim` input)."""
    l, d = x.shape
    k_taps = params["w_conv"].shape[0] // d
    sim_t = sim.T            # transpose once outside: lane-dense MXU feed in-kernel
    inputs = (
        x, sim_t,
        params["w_in"], params["b_in"],
        params["w_conv"], params["b_conv"],
        params["w_xf"], params["b_xf"],
        params["A_T"], params["D"],
        params["w_out"], params["b_out"],
    )
    vmem = lambda: pl.BlockSpec(memory_space=pltpu.MemorySpace.VMEM)
    return pl.pallas_call(
        mamba_block_kernel,
        out_shape=jax.ShapeDtypeStruct((l, d), jnp.float32),
        in_specs=[vmem() for _ in inputs],
        out_specs=vmem(),
        scratch_shapes=[pltpu.VMEM((_pad_rows(k_taps) + l, d), jnp.float32)],
    )(*inputs)


def init_params(key, d=D_MODEL, n=D_STATE, k=D_CONV):
    """Deterministic synthetic parameters matching the PyTorch module's shapes,
    pre-arranged into kernel-friendly (fused / transposed / stacked) layouts."""
    def uni(key, fan_in, shape):
        bound = 1.0 / np.sqrt(fan_in)
        return jax.random.uniform(key, shape, jnp.float32, -bound, bound)

    ks = jax.random.split(key, 9)
    w_in = uni(ks[0], d, (2 * d, d))          # nn.Linear(SIZE, 2*SIZE).weight (out, in)
    b_in = uni(ks[1], d, (2 * d,))
    w_out = uni(ks[2], d, (d, d))             # nn.Linear(SIZE, SIZE)
    b_out = uni(ks[3], d, (d,))
    w_x = uni(ks[4], d, (d + 2 * n, d))       # nn.Linear(SIZE, SIZE+2*d_state, bias=False)
    w_dt = uni(ks[5], d, (d, d))              # nn.Linear(SIZE, SIZE)
    b_dt = uni(ks[6], d, (d,))
    w_conv = uni(ks[7], d * k, (d, d, k))     # nn.Conv1d(SIZE, SIZE, d_conv).weight
    b_conv = uni(ks[8], d * k, (d,))
    a_log = jnp.log(jnp.tile(jnp.arange(1, n + 1, dtype=jnp.float32)[None, :], (d, 1)))  # (d, n)
    d_param = jnp.ones((d,), jnp.float32)

    # stacked conv weight: rows [tap0 (d_in), tap1 (d_in), ...] -> (K*d_in, d_out)
    w_conv_stacked = jnp.transpose(w_conv, (2, 1, 0)).reshape(k * d, d)

    # one-time weight fold: delta path has no nonlinearity between x_proj and
    # dt_proj, so dt_proj is absorbed into the delta columns of x_proj.
    w_x_t = w_x.T                                             # (d, d+2n)
    w_dt_t = w_dt.T                                           # (d, d)
    w_xf = jnp.concatenate([w_x_t[:, :d] @ w_dt_t, w_x_t[:, d:]], axis=1)   # (d, d+2n)
    b_xf = jnp.concatenate([b_dt[None, :], jnp.zeros((1, 2 * n), jnp.float32)], axis=1)

    return {
        "w_in": w_in.T, "b_in": b_in[None, :],        # (d, 2d), (1, 2d)   cols: [x | res]
        "w_out": w_out.T, "b_out": b_out[None, :],    # (d, d),  (1, d)
        "w_x": w_x.T,                                 # (d, d+2n) cols: [delta | B | C]  (reference only)
        "w_dt": w_dt.T, "b_dt": b_dt[None, :],        # (d, d),  (1, d)                  (reference only)
        "w_xf": w_xf, "b_xf": b_xf,                   # fused x_proj+dt_proj (kernel)
        "w_conv": w_conv_stacked,                     # (K*d, d)
        "b_conv": b_conv[None, :],                    # (1, d)
        "A_T": (-jnp.exp(a_log)).T,                   # (n, d)
        "D": d_param[None, :],                        # (1, d)
    }


def reference_forward(x, sim, params):
    """Pure-JAX reference mirroring the PyTorch forward (uses the UNFUSED
    x_proj / dt_proj weights to also verify the init-time weight fold)."""
    l, d = x.shape
    n = params["A_T"].shape[0]
    k = params["w_conv"].shape[0] // d

    xr = x @ params["w_in"] + params["b_in"]
    xi, res = xr[:, :d], xr[:, d:]

    x_pad = jnp.concatenate([jnp.zeros((k - 1, d), jnp.float32), xi], axis=0)
    conv = jnp.zeros((l, d), jnp.float32) + params["b_conv"]
    for j in range(k):
        conv = conv + x_pad[j:j + l] @ params["w_conv"][j * d:(j + 1) * d]
    u = conv * jax.nn.sigmoid(conv)

    xdbl = u @ params["w_x"]
    delta_in, b_mat, c_mat = xdbl[:, :d], xdbl[:, d:d + n], xdbl[:, d + n:]
    delta = jax.nn.softplus(delta_in @ params["w_dt"] + params["b_dt"])

    a = params["A_T"].T                                   # (d, n)
    delta_a = jnp.exp(delta[:, :, None] * a[None, :, :])  # (l, d, n)
    delta_bu = delta[:, :, None] * b_mat[:, None, :] * u[:, :, None]
    state = jnp.zeros((d, n), jnp.float32)
    ys = []
    for i in range(l):
        state = delta_a[i] * state + delta_bu[i]
        ys.append(jnp.sum(state * c_mat[i][None, :], axis=-1))
    y = jnp.stack(ys, axis=0)                             # (l, d)

    y = y @ sim.T + u * params["D"][0]
    y = y * (res * jax.nn.sigmoid(res))
    return y @ params["w_out"] + params["b_out"]


if __name__ == "__main__":
    key = jax.random.PRNGKey(0)
    k_params, k_x, k_sim = jax.random.split(key, 3)

    params = init_params(k_params)
    # Module forward takes x:(l, d) (it unsqueezes batch=1) and sim:(1, d, d).
    x = jax.random.normal(k_x, (SEQ_LEN, D_MODEL), jnp.float32)
    sim_b = jax.random.normal(k_sim, (1, D_MODEL, D_MODEL), jnp.float32) * 0.1
    sim = sim_b[0]

    out = mamba_block_forward(x, sim, params)
    out = jax.block_until_ready(out)
    assert out.shape == (SEQ_LEN, D_MODEL)

    ref = reference_forward(x, sim, params)
    np.testing.assert_allclose(np.asarray(out), np.asarray(ref), rtol=2e-2, atol=2e-2)

    print("KERNEL_OK")
</pallas_src>

<mosaic_0001>
module attributes {stable_mosaic.version = 11 : i64} {
  func.func @mamba_block_kernel(%arg0: memref<8x32xf32, #tpu.memory_space<vmem>>, %arg1: memref<32x32xf32, #tpu.memory_space<vmem>>, %arg2: memref<32x64xf32, #tpu.memory_space<vmem>>, %arg3: memref<1x64xf32, #tpu.memory_space<vmem>>, %arg4: memref<128x32xf32, #tpu.memory_space<vmem>>, %arg5: memref<1x32xf32, #tpu.memory_space<vmem>>, %arg6: memref<32x64xf32, #tpu.memory_space<vmem>>, %arg7: memref<1x64xf32, #tpu.memory_space<vmem>>, %arg8: memref<16x32xf32, #tpu.memory_space<vmem>>, %arg9: memref<1x32xf32, #tpu.memory_space<vmem>>, %arg10: memref<32x32xf32, #tpu.memory_space<vmem>>, %arg11: memref<1x32xf32, #tpu.memory_space<vmem>>, %arg12: memref<8x32xf32, #tpu.memory_space<vmem>>, %arg13: memref<16x32xf32, #tpu.memory_space<vmem>>) attributes {dimension_semantics = [], scalar_prefetch = 0 : i64, scratch_operands = 1 : i64, tpu.core_type = #tpu.core_type<tc>} {
    %c0 = arith.constant 0 : index
    %c0_0 = arith.constant 0 : index
    %0 = vector.load %arg0[%c0, %c0_0] : memref<8x32xf32, #tpu.memory_space<vmem>>, vector<8x32xf32>
    %c0_1 = arith.constant 0 : index
    %c0_2 = arith.constant 0 : index
    %1 = vector.load %arg2[%c0_1, %c0_2] : memref<32x64xf32, #tpu.memory_space<vmem>>, vector<32x64xf32>
    %cst = arith.constant dense<0.000000e+00> : vector<8x64xf32>
    %2 = tpu.matmul %0, %1, %cst {dimension_numbers = #tpu.dot_dimension_numbers<[1], [0], [0], [1], [0, 0, 1, 1], [], []>} : vector<8x32xf32>, vector<32x64xf32>, vector<8x64xf32> -> vector<8x64xf32>
    %c0_3 = arith.constant 0 : index
    %c0_4 = arith.constant 0 : index
    %3 = vector.load %arg3[%c0_3, %c0_4] : memref<1x64xf32, #tpu.memory_space<vmem>>, vector<1x64xf32>
    %4 = vector.broadcast %3 : vector<1x64xf32> to vector<8x64xf32>
    %5 = arith.addf %2, %4 : vector<8x64xf32>
    %6 = vector.extract_strided_slice %5 {offsets = [0, 0], sizes = [8, 32], strides = [1, 1]} : vector<8x64xf32> to vector<8x32xf32>
    %7 = vector.extract_strided_slice %5 {offsets = [0, 32], sizes = [8, 32], strides = [1, 1]} : vector<8x64xf32> to vector<8x32xf32>
    %cst_5 = arith.constant 0.000000e+00 : f32
    %8 = vector.broadcast %cst_5 : f32 to vector<8x32xf32>
    %c0_6 = arith.constant 0 : index
    %c0_7 = arith.constant 0 : index
    %9 = vector.load %arg13[%c0_6, %c0_7] : memref<16x32xf32, #tpu.memory_space<vmem>>, vector<8x32xf32>
    tpu.vector_store %arg13[%c0_6, %c0_7], %8 {strides = array<i32>} : memref<16x32xf32, #tpu.memory_space<vmem>>, vector<8x32xf32>,
    %c8 = arith.constant 8 : index
    %c0_8 = arith.constant 0 : index
    %10 = vector.load %arg13[%c8, %c0_8] : memref<16x32xf32, #tpu.memory_space<vmem>>, vector<8x32xf32>
    tpu.vector_store %arg13[%c8, %c0_8], %6 {strides = array<i32>} : memref<16x32xf32, #tpu.memory_space<vmem>>, vector<8x32xf32>,
    %c5 = arith.constant 5 : index
    %c0_9 = arith.constant 0 : index
    %11 = vector.load %arg13[%c5, %c0_9] : memref<16x32xf32, #tpu.memory_space<vmem>>, vector<8x32xf32>
    %c6 = arith.constant 6 : index
    %c0_10 = arith.constant 0 : index
    %12 = vector.load %arg13[%c6, %c0_10] : memref<16x32xf32, #tpu.memory_space<vmem>>, vector<8x32xf32>
    %c7 = arith.constant 7 : index
    %c0_11 = arith.constant 0 : index
    %13 = vector.load %arg13[%c7, %c0_11] : memref<16x32xf32, #tpu.memory_space<vmem>>, vector<8x32xf32>
    %c8_12 = arith.constant 8 : index
    %c0_13 = arith.constant 0 : index
    %14 = vector.load %arg13[%c8_12, %c0_13] : memref<16x32xf32, #tpu.memory_space<vmem>>, vector<8x32xf32>
    %15 = tpu.concatenate %11, %12, %13, %14 in 1 : vector<8x32xf32>, vector<8x32xf32>, vector<8x32xf32>, vector<8x32xf32> -> vector<8x128xf32>
    %c0_14 = arith.constant 0 : index
    %c0_15 = arith.constant 0 : index
    %16 = vector.load %arg4[%c0_14, %c0_15] : memref<128x32xf32, #tpu.memory_space<vmem>>, vector<128x32xf32>
    %cst_16 = arith.constant dense<0.000000e+00> : vector<8x32xf32>
    %17 = tpu.matmul %15, %16, %cst_16 {dimension_numbers = #tpu.dot_dimension_numbers<[1], [0], [0], [1], [0, 0, 1, 1], [], []>} : vector<8x128xf32>, vector<128x32xf32>, vector<8x32xf32> -> vector<8x32xf32>
    %c0_17 = arith.constant 0 : index
    %c0_18 = arith.constant 0 : index
    %18 = vector.load %arg5[%c0_17, %c0_18] : memref<1x32xf32, #tpu.memory_space<vmem>>, vector<1x32xf32>
    %19 = vector.broadcast %18 : vector<1x32xf32> to vector<8x32xf32>
    %20 = arith.addf %17, %19 : vector<8x32xf32>
    %cst_19 = arith.constant 0.000000e+00 : f32
    %21 = vector.broadcast %cst_19 : f32 to vector<8x32xf32>
    %22 = arith.subf %21, %20 : vector<8x32xf32>
    %23 = math.exp %22 : vector<8x32xf32>
    %cst_20 = arith.constant 1.000000e+00 : f32
    %24 = vector.broadcast %cst_20 : f32 to vector<8x32xf32>
    %25 = arith.addf %24, %23 : vector<8x32xf32>
    %cst_21 = arith.constant 1.000000e+00 : f32
    %26 = vector.broadcast %cst_21 : f32 to vector<8x32xf32>
    %27 = arith.divf %26, %25 : vector<8x32xf32>
    %28 = arith.mulf %20, %27 : vector<8x32xf32>
    %c0_22 = arith.constant 0 : index
    %c0_23 = arith.constant 0 : index
    %29 = vector.load %arg6[%c0_22, %c0_23] : memref<32x64xf32, #tpu.memory_space<vmem>>, vector<32x64xf32>
    %cst_24 = arith.constant dense<0.000000e+00> : vector<8x64xf32>
    %30 = tpu.matmul %28, %29, %cst_24 {dimension_numbers = #tpu.dot_dimension_numbers<[1], [0], [0], [1], [0, 0, 1, 1], [], []>} : vector<8x32xf32>, vector<32x64xf32>, vector<8x64xf32> -> vector<8x64xf32>
    %c0_25 = arith.constant 0 : index
    %c0_26 = arith.constant 0 : index
    %31 = vector.load %arg7[%c0_25, %c0_26] : memref<1x64xf32, #tpu.memory_space<vmem>>, vector<1x64xf32>
    %32 = vector.broadcast %31 : vector<1x64xf32> to vector<8x64xf32>
    %33 = arith.addf %30, %32 : vector<8x64xf32>
    %34 = vector.extract_strided_slice %33 {offsets = [0, 0], sizes = [8, 32], strides = [1, 1]} : vector<8x64xf32> to vector<8x32xf32>
    %cst_27 = arith.constant 0.000000e+00 : f32
    %35 = vector.broadcast %cst_27 : f32 to vector<8x32xf32>
    %36 = arith.maximumf %34, %35 : vector<8x32xf32>
    %37 = math.absf %34 : vector<8x32xf32>
    %cst_28 = arith.constant 0.000000e+00 : f32
    %38 = vector.broadcast %cst_28 : f32 to vector<8x32xf32>
    %39 = arith.subf %38, %37 : vector<8x32xf32>
    %40 = math.exp %39 : vector<8x32xf32>
    %cst_29 = arith.constant 1.000000e+00 : f32
    %41 = vector.broadcast %cst_29 : f32 to vector<8x32xf32>
    %42 = arith.addf %41, %40 : vector<8x32xf32>
    %43 = math.log %42 : vector<8x32xf32>
    %44 = arith.addf %36, %43 : vector<8x32xf32>
    %45 = vector.extract_strided_slice %33 {offsets = [0, 32], sizes = [8, 16], strides = [1, 1]} : vector<8x64xf32> to vector<8x16xf32>
    %46 = vector.extract_strided_slice %33 {offsets = [0, 48], sizes = [8, 16], strides = [1, 1]} : vector<8x64xf32> to vector<8x16xf32>
    %c0_30 = arith.constant 0 : index
    %c0_31 = arith.constant 0 : index
    %47 = vector.load %arg8[%c0_30, %c0_31] : memref<16x32xf32, #tpu.memory_space<vmem>>, vector<16x32xf32>
    %48 = vector.shape_cast %44 : vector<8x32xf32> to vector<8x1x32xf32>
    %49 = vector.shape_cast %47 : vector<16x32xf32> to vector<1x16x32xf32>
    %50 = vector.broadcast %48 : vector<8x1x32xf32> to vector<8x16x32xf32>
    %51 = vector.broadcast %49 : vector<1x16x32xf32> to vector<8x16x32xf32>
    %52 = arith.mulf %50, %51 : vector<8x16x32xf32>
    %53 = math.exp %52 : vector<8x16x32xf32>
    %54 = vector.shape_cast %45 : vector<8x16xf32> to vector<8x16x1xf32>
    %55 = arith.mulf %44, %28 : vector<8x32xf32>
    %56 = vector.shape_cast %55 : vector<8x32xf32> to vector<8x1x32xf32>
    %57 = vector.broadcast %54 : vector<8x16x1xf32> to vector<8x16x32xf32>
    %58 = vector.broadcast %56 : vector<8x1x32xf32> to vector<8x16x32xf32>
    %59 = arith.mulf %57, %58 : vector<8x16x32xf32>
    %60 = vector.shape_cast %46 : vector<8x16xf32> to vector<8x16x1xf32>
    %61 = vector.shape_cast %60 : vector<8x16x1xf32> to vector<8x16x1xf32>
    %62 = vector.broadcast %61 : vector<8x16x1xf32> to vector<8x16x32xf32>
    %cst_32 = arith.constant 0.000000e+00 : f32
    %63 = vector.broadcast %cst_32 : f32 to vector<16x32xf32>
    %64 = vector.extract_strided_slice %53 {offsets = [0, 0, 0], sizes = [1, 16, 32], strides = [1, 1, 1]} : vector<8x16x32xf32> to vector<1x16x32xf32>
    %65 = vector.shape_cast %64 : vector<1x16x32xf32> to vector<16x32xf32>
    %66 = arith.mulf %65, %63 : vector<16x32xf32>
    %67 = vector.extract_strided_slice %59 {offsets = [0, 0, 0], sizes = [1, 16, 32], strides = [1, 1, 1]} : vector<8x16x32xf32> to vector<1x16x32xf32>
    %68 = vector.shape_cast %67 : vector<1x16x32xf32> to vector<16x32xf32>
    %69 = arith.addf %66, %68 : vector<16x32xf32>
    %70 = vector.extract_strided_slice %62 {offsets = [0, 0, 0], sizes = [1, 16, 32], strides = [1, 1, 1]} : vector<8x16x32xf32> to vector<1x16x32xf32>
    %71 = vector.shape_cast %70 : vector<1x16x32xf32> to vector<16x32xf32>
    %72 = arith.mulf %71, %69 : vector<16x32xf32>
    %cst_33 = arith.constant dense<0.000000e+00> : vector<32xf32>
    %73 = vector.multi_reduction <add>, %72, %cst_33 [0] : vector<16x32xf32> to vector<32xf32>
    %74 = vector.shape_cast %73 : vector<32xf32> to vector<1x32xf32>
    %75 = vector.extract_strided_slice %53 {offsets = [1, 0, 0], sizes = [1, 16, 32], strides = [1, 1, 1]} : vector<8x16x32xf32> to vector<1x16x32xf32>
    %76 = vector.shape_cast %75 : vector<1x16x32xf32> to vector<16x32xf32>
    %77 = arith.mulf %76, %69 : vector<16x32xf32>
    %78 = vector.extract_strided_slice %59 {offsets = [1, 0, 0], sizes = [1, 16, 32], strides = [1, 1, 1]} : vector<8x16x32xf32> to vector<1x16x32xf32>
    %79 = vector.shape_cast %78 : vector<1x16x32xf32> to vector<16x32xf32>
    %80 = arith.addf %77, %79 : vector<16x32xf32>
    %81 = vector.extract_strided_slice %62 {offsets = [1, 0, 0], sizes = [1, 16, 32], strides = [1, 1, 1]} : vector<8x16x32xf32> to vector<1x16x32xf32>
    %82 = vector.shape_cast %81 : vector<1x16x32xf32> to vector<16x32xf32>
    %83 = arith.mulf %82, %80 : vector<16x32xf32>
    %cst_34 = arith.constant dense<0.000000e+00> : vector<32xf32>
    %84 = vector.multi_reduction <add>, %83, %cst_34 [0] : vector<16x32xf32> to vector<32xf32>
    %85 = vector.shape_cast %84 : vector<32xf32> to vector<1x32xf32>
    %86 = vector.extract_strided_slice %53 {offsets = [2, 0, 0], sizes = [1, 16, 32], strides = [1, 1, 1]} : vector<8x16x32xf32> to vector<1x16x32xf32>
    %87 = vector.shape_cast %86 : vector<1x16x32xf32> to vector<16x32xf32>
    %88 = arith.mulf %87, %80 : vector<16x32xf32>
    %89 = vector.extract_strided_slice %59 {offsets = [2, 0, 0], sizes = [1, 16, 32], strides = [1, 1, 1]} : vector<8x16x32xf32> to vector<1x16x32xf32>
    %90 = vector.shape_cast %89 : vector<1x16x32xf32> to vector<16x32xf32>
    %91 = arith.addf %88, %90 : vector<16x32xf32>
    %92 = vector.extract_strided_slice %62 {offsets = [2, 0, 0], sizes = [1, 16, 32], strides = [1, 1, 1]} : vector<8x16x32xf32> to vector<1x16x32xf32>
    %93 = vector.shape_cast %92 : vector<1x16x32xf32> to vector<16x32xf32>
    %94 = arith.mulf %93, %91 : vector<16x32xf32>
    %cst_35 = arith.constant dense<0.000000e+00> : vector<32xf32>
    %95 = vector.multi_reduction <add>, %94, %cst_35 [0] : vector<16x32xf32> to vector<32xf32>
    %96 = vector.shape_cast %95 : vector<32xf32> to vector<1x32xf32>
    %97 = vector.extract_strided_slice %53 {offsets = [3, 0, 0], sizes = [1, 16, 32], strides = [1, 1, 1]} : vector<8x16x32xf32> to vector<1x16x32xf32>
    %98 = vector.shape_cast %97 : vector<1x16x32xf32> to vector<16x32xf32>
    %99 = arith.mulf %98, %91 : vector<16x32xf32>
    %100 = vector.extract_strided_slice %59 {offsets = [3, 0, 0], sizes = [1, 16, 32], strides = [1, 1, 1]} : vector<8x16x32xf32> to vector<1x16x32xf32>
    %101 = vector.shape_cast %100 : vector<1x16x32xf32> to vector<16x32xf32>
    %102 = arith.addf %99, %101 : vector<16x32xf32>
    %103 = vector.extract_strided_slice %62 {offsets = [3, 0, 0], sizes = [1, 16, 32], strides = [1, 1, 1]} : vector<8x16x32xf32> to vector<1x16x32xf32>
    %104 = vector.shape_cast %103 : vector<1x16x32xf32> to vector<16x32xf32>
    %105 = arith.mulf %104, %102 : vector<16x32xf32>
    %cst_36 = arith.constant dense<0.000000e+00> : vector<32xf32>
    %106 = vector.multi_reduction <add>, %105, %cst_36 [0] : vector<16x32xf32> to vector<32xf32>
    %107 = vector.shape_cast %106 : vector<32xf32> to vector<1x32xf32>
    %108 = vector.extract_strided_slice %53 {offsets = [4, 0, 0], sizes = [1, 16, 32], strides = [1, 1, 1]} : vector<8x16x32xf32> to vector<1x16x32xf32>
    %109 = vector.shape_cast %108 : vector<1x16x32xf32> to vector<16x32xf32>
    %110 = arith.mulf %109, %102 : vector<16x32xf32>
    %111 = vector.extract_strided_slice %59 {offsets = [4, 0, 0], sizes = [1, 16, 32], strides = [1, 1, 1]} : vector<8x16x32xf32> to vector<1x16x32xf32>
    %112 = vector.shape_cast %111 : vector<1x16x32xf32> to vector<16x32xf32>
    %113 = arith.addf %110, %112 : vector<16x32xf32>
    %114 = vector.extract_strided_slice %62 {offsets = [4, 0, 0], sizes = [1, 16, 32], strides = [1, 1, 1]} : vector<8x16x32xf32> to vector<1x16x32xf32>
    %115 = vector.shape_cast %114 : vector<1x16x32xf32> to vector<16x32xf32>
    %116 = arith.mulf %115, %113 : vector<16x32xf32>
    %cst_37 = arith.constant dense<0.000000e+00> : vector<32xf32>
    %117 = vector.multi_reduction <add>, %116, %cst_37 [0] : vector<16x32xf32> to vector<32xf32>
    %118 = vector.shape_cast %117 : vector<32xf32> to vector<1x32xf32>
    %119 = vector.extract_strided_slice %53 {offsets = [5, 0, 0], sizes = [1, 16, 32], strides = [1, 1, 1]} : vector<8x16x32xf32> to vector<1x16x32xf32>
    %120 = vector.shape_cast %119 : vector<1x16x32xf32> to vector<16x32xf32>
    %121 = arith.mulf %120, %113 : vector<16x32xf32>
    %122 = vector.extract_strided_slice %59 {offsets = [5, 0, 0], sizes = [1, 16, 32], strides = [1, 1, 1]} : vector<8x16x32xf32> to vector<1x16x32xf32>
    %123 = vector.shape_cast %122 : vector<1x16x32xf32> to vector<16x32xf32>
    %124 = arith.addf %121, %123 : vector<16x32xf32>
    %125 = vector.extract_strided_slice %62 {offsets = [5, 0, 0], sizes = [1, 16, 32], strides = [1, 1, 1]} : vector<8x16x32xf32> to vector<1x16x32xf32>
    %126 = vector.shape_cast %125 : vector<1x16x32xf32> to vector<16x32xf32>
    %127 = arith.mulf %126, %124 : vector<16x32xf32>
    %cst_38 = arith.constant dense<0.000000e+00> : vector<32xf32>
    %128 = vector.multi_reduction <add>, %127, %cst_38 [0] : vector<16x32xf32> to vector<32xf32>
    %129 = vector.shape_cast %128 : vector<32xf32> to vector<1x32xf32>
    %130 = vector.extract_strided_slice %53 {offsets = [6, 0, 0], sizes = [1, 16, 32], strides = [1, 1, 1]} : vector<8x16x32xf32> to vector<1x16x32xf32>
    %131 = vector.shape_cast %130 : vector<1x16x32xf32> to vector<16x32xf32>
    %132 = arith.mulf %131, %124 : vector<16x32xf32>
    %133 = vector.extract_strided_slice %59 {offsets = [6, 0, 0], sizes = [1, 16, 32], strides = [1, 1, 1]} : vector<8x16x32xf32> to vector<1x16x32xf32>
    %134 = vector.shape_cast %133 : vector<1x16x32xf32> to vector<16x32xf32>
    %135 = arith.addf %132, %134 : vector<16x32xf32>
    %136 = vector.extract_strided_slice %62 {offsets = [6, 0, 0], sizes = [1, 16, 32], strides = [1, 1, 1]} : vector<8x16x32xf32> to vector<1x16x32xf32>
    %137 = vector.shape_cast %136 : vector<1x16x32xf32> to vector<16x32xf32>
    %138 = arith.mulf %137, %135 : vector<16x32xf32>
    %cst_39 = arith.constant dense<0.000000e+00> : vector<32xf32>
    %139 = vector.multi_reduction <add>, %138, %cst_39 [0] : vector<16x32xf32> to vector<32xf32>
    %140 = vector.shape_cast %139 : vector<32xf32> to vector<1x32xf32>
    %141 = vector.extract_strided_slice %53 {offsets = [7, 0, 0], sizes = [1, 16, 32], strides = [1, 1, 1]} : vector<8x16x32xf32> to vector<1x16x32xf32>
    %142 = vector.shape_cast %141 : vector<1x16x32xf32> to vector<16x32xf32>
    %143 = arith.mulf %142, %135 : vector<16x32xf32>
    %144 = vector.extract_strided_slice %59 {offsets = [7, 0, 0], sizes = [1, 16, 32], strides = [1, 1, 1]} : vector<8x16x32xf32> to vector<1x16x32xf32>
    %145 = vector.shape_cast %144 : vector<1x16x32xf32> to vector<16x32xf32>
    %146 = arith.addf %143, %145 : vector<16x32xf32>
    %147 = vector.extract_strided_slice %62 {offsets = [7, 0, 0], sizes = [1, 16, 32], strides = [1, 1, 1]} : vector<8x16x32xf32> to vector<1x16x32xf32>
    %148 = vector.shape_cast %147 : vector<1x16x32xf32> to vector<16x32xf32>
    %149 = arith.mulf %148, %146 : vector<16x32xf32>
    %cst_40 = arith.constant dense<0.000000e+00> : vector<32xf32>
    %150 = vector.multi_reduction <add>, %149, %cst_40 [0] : vector<16x32xf32> to vector<32xf32>
    %151 = vector.shape_cast %150 : vector<32xf32> to vector<1x32xf32>
    %152 = tpu.concatenate %74, %85, %96, %107, %118, %129, %140, %151 in 0 : vector<1x32xf32>, vector<1x32xf32>, vector<1x32xf32>, vector<1x32xf32>, vector<1x32xf32>, vector<1x32xf32>, vector<1x32xf32>, vector<1x32xf32> -> vector<8x32xf32>
    %c0_41 = arith.constant 0 : index
    %c0_42 = arith.constant 0 : index
    %153 = vector.load %arg1[%c0_41, %c0_42] : memref<32x32xf32, #tpu.memory_space<vmem>>, vector<32x32xf32>
    %cst_43 = arith.constant dense<0.000000e+00> : vector<8x32xf32>
    %154 = tpu.matmul %152, %153, %cst_43 {dimension_numbers = #tpu.dot_dimension_numbers<[1], [0], [0], [1], [0, 0, 1, 1], [], []>} : vector<8x32xf32>, vector<32x32xf32>, vector<8x32xf32> -> vector<8x32xf32>
    %c0_44 = arith.constant 0 : index
    %c0_45 = arith.constant 0 : index
    %155 = vector.load %arg9[%c0_44, %c0_45] : memref<1x32xf32, #tpu.memory_space<vmem>>, vector<1x32xf32>
    %156 = vector.broadcast %155 : vector<1x32xf32> to vector<8x32xf32>
    %157 = arith.mulf %28, %156 : vector<8x32xf32>
    %158 = arith.addf %154, %157 : vector<8x32xf32>
    %cst_46 = arith.constant 0.000000e+00 : f32
    %159 = vector.broadcast %cst_46 : f32 to vector<8x32xf32>
    %160 = arith.subf %159, %7 : vector<8x32xf32>
    %161 = math.exp %160 : vector<8x32xf32>
    %cst_47 = arith.constant 1.000000e+00 : f32
    %162 = vector.broadcast %cst_47 : f32 to vector<8x32xf32>
    %163 = arith.addf %162, %161 : vector<8x32xf32>
    %cst_48 = arith.constant 1.000000e+00 : f32
    %164 = vector.broadcast %cst_48 : f32 to vector<8x32xf32>
    %165 = arith.divf %164, %163 : vector<8x32xf32>
    %166 = arith.mulf %7, %165 : vector<8x32xf32>
    %167 = arith.mulf %158, %166 : vector<8x32xf32>
    %c0_49 = arith.constant 0 : index
    %c0_50 = arith.constant 0 : index
    %168 = vector.load %arg10[%c0_49, %c0_50] : memref<32x32xf32, #tpu.memory_space<vmem>>, vector<32x32xf32>
    %cst_51 = arith.constant dense<0.000000e+00> : vector<8x32xf32>
    %169 = tpu.matmul %167, %168, %cst_51 {dimension_numbers = #tpu.dot_dimension_numbers<[1], [0], [0], [1], [0, 0, 1, 1], [], []>} : vector<8x32xf32>, vector<32x32xf32>, vector<8x32xf32> -> vector<8x32xf32>
    %c0_52 = arith.constant 0 : index
    %c0_53 = arith.constant 0 : index
    %170 = vector.load %arg11[%c0_52, %c0_53] : memref<1x32xf32, #tpu.memory_space<vmem>>, vector<1x32xf32>
    %171 = vector.broadcast %170 : vector<1x32xf32> to vector<8x32xf32>
    %172 = arith.addf %169, %171 : vector<8x32xf32>
    %c0_54 = arith.constant 0 : index
    %c0_55 = arith.constant 0 : index
    %173 = vector.load %arg12[%c0_54, %c0_55] : memref<8x32xf32, #tpu.memory_space<vmem>>, vector<8x32xf32>
    tpu.vector_store %arg12[%c0_54, %c0_55], %172 {strides = array<i32>} : memref<8x32xf32, #tpu.memory_space<vmem>>, vector<8x32xf32>,
    return
  }
}

</mosaic_0001>

<bundles_post_ra>
// kernel: tpu_custom_call.1
= control target key start
LH: loop header
LB: loop body
LE: loop exit
PB: predicated region body
PF: predicated region fallthrough
CT: control target
= control target key end

     0   :  { %v1330_v3 = vmov 0.0|0.0   ;;  %vm54_vm0 = vcmask 261120   ;;  %vm1331_vm1 = vmmov 0   ;;  %v1332_v6 = vmov 0.0   ;;  %s1768_s0 = inlined_call_operand.vmem [shape: f32[8,32], index: 0, kind: input, shape index: {}]   ;;  %s1769_s1 = inlined_call_operand.vmem [shape: f32[32,32], index: 1, kind: input, shape index: {}]   ;;  %s1770_s2 = inlined_call_operand.vmem [shape: f32[32,64], index: 2, kind: input, shape index: {}]   ;;  %s1771_s3 = inlined_call_operand.vmem [shape: f32[1,64], index: 3, kind: input, shape index: {}]   ;;  %s1772_s4 = inlined_call_operand.vmem [shape: f32[128,32], index: 4, kind: input, shape index: {}]   ;;  %s1773_s5 = inlined_call_operand.vmem [shape: f32[1,32], index: 5, kind: input, shape index: {}]   ;;  %s1774_s6 = inlined_call_operand.vmem [shape: f32[32,64], index: 6, kind: input, shape index: {}]   ;;  %s1775_s7 = inlined_call_operand.vmem [shape: f32[1,64], index: 7, kind: input, shape index: {}]   ;;  %s1776_s8 = inlined_call_operand.vmem [shape: f32[16,32], index: 8, kind: input, shape index: {}]   ;;  %s1777_s9 = inlined_call_operand.vmem [shape: f32[1,32], index: 9, kind: input, shape index: {}]   ;;  %s1778_s10 = inlined_call_operand.vmem [shape: f32[32,32], index: 10, kind: input, shape index: {}]   ;;  %s1779_s11 = inlined_call_operand.vmem [shape: f32[1,32], index: 11, kind: input, shape index: {}]   ;;  %s1780_s12 = inlined_call_operand.hbm [shape: f32[8,32], index: 12, kind: output, shape index: {}]  }
   0x1   :  { %v43_v0 = vld [vmem:[%s1770_s2] sm:$0xff]  ;;  %v44_v1 = vld [vmem:[%s1770_s2 + $0x8] sm:$0xff]  ;;  %v45_v2 = vld [vmem:[%s1770_s2 + $0x10] sm:$0xff]  ;;  %1206 = vmatprep.subr.bf16.mxu0 %v1330_v3  ;;  %1212 = vmatprep.subr.bf16.mxu1 %v1330_v3  ;;  %128 = vst.msk [vmem:[#allocation2] sm:$0xff] %vm54_vm0, %v1332_v6 }
   0x2   :  { %v1207_v4 = vpack.c.bf16 %v44_v1, %v43_v0  ;;  %v46_v5 = vld [vmem:[%s1770_s2 + $0x18] sm:$0xff]  ;;  %1135 = vmatprep.mubr.msk.f32.mxu0 %vm1331_vm1, %v1332_v6  ;;  %1170 = vmatprep.mubr.msk.f32.mxu1 %vm1331_vm1, %v1332_v6 }
   0x3   :  { %17 = vsyncpa [#allocation4], 0  ;;  %v1210_v7 = vpack.c.bf16 %v46_v5, %v45_v2  ;;  %v42_v8 = vld [vmem:[%s1768_s0] sm:$0xff]  ;;  %v152_v10 = vld [vmem:[%s1772_s4 + $0x8] sm:$0xff]  ;;  %s1334_s25 = smov 32   ;;  %s1335_s26 = smov 64   ;;  %v351_v63 = vlaneseq }
   0x4   :  { %1208 = vmatpush3.bf16.msra.mxu0 %v1207_v4  ;;  %v151_v9 = vld [vmem:[%s1772_s4] sm:$0xff]  ;;  %v153_v11 = vld [vmem:[%s1772_s4 + $0x10] sm:$0xff]  ;;  %v154_v13 = vld [vmem:[%s1772_s4 + $0x18] sm:$0xff]  ;;  %vm147_vm2 = vcmask 523264   ;;  %vm149_vm3 = vcmask 785408   ;;  %vm871_vm4 = vcmask 1040384  }
   0x5   :  { %1209 = vmatprep.subr.bf16.mxu0 %v1330_v3  ;;  %v1213_v12 = vpack.c.bf16 %v152_v10, %v151_v9  ;;  %v1216_v14 = vpack.c.bf16 %v154_v13, %v153_v11  ;;  %v155_v15 = vld [vmem:[%s1772_s4 + $0x20] sm:$0xff]  ;;  %v156_v16 = vld [vmem:[%s1772_s4 + $0x28] sm:$0xff]  ;;  %v157_v18 = vld [vmem:[%s1772_s4 + $0x30] sm:$0xff]  ;;  %v1518_v0 = vshrl.u32 %v351_v63, 7  ;;  %vm873_vm5 = vcmask 1041408  }
   0x6   :  { %v1219_v17 = vpack.c.bf16 %v156_v16, %v155_v15  ;;  %v158_v19 = vld [vmem:[%s1772_s4 + $0x38] sm:$0xff]  ;;  %v159_v21 = vld [vmem:[%s1772_s4 + $0x40] sm:$0xff]  ;;  %v160_v22 = vld [vmem:[%s1772_s4 + $0x48] sm:$0xff]  ;;  %vm875_vm6 = vcmask 1042432   ;;  %vm877_vm7 = vcmask 1043456   ;;  %vm879_vm8 = vcmask 1044480  }
   0x7   :  { %1214 = vmatpush3.bf16.msra.mxu1 %v1213_v12  ;;  %v1222_v20 = vpack.c.bf16 %v158_v19, %v157_v18  ;;  %v1225_v23 = vpack.c.bf16 %v160_v22, %v159_v21  ;;  %v161_v24 = vld [vmem:[%s1772_s4 + $0x50] sm:$0xff]  ;;  %v162_v25 = vld [vmem:[%s1772_s4 + $0x58] sm:$0xff]  ;;  %v163_v27 = vld [vmem:[%s1772_s4 + $0x60] sm:$0xff]  ;;  %v1524_v2 = vsub.s32 0, %v1518_v0  ;;  %v498_v9 = vsub.s32 1, %v1518_v0 }
   0x8   :  { %1211 = vmatpush3.bf16.msra.mxu0 %v1210_v7  ;;  %1215 = vmatprep.subr.bf16.mxu1 %v1330_v3  ;;  %v1228_v26 = vpack.c.bf16 %v162_v25, %v161_v24  ;;  %v164_v28 = vld [vmem:[%s1772_s4 + $0x68] sm:$0xff]  ;;  %v1081_v30 = vld [vmem:[%s1771_s3] ss:$0 sm:$0xff]  ;;  %v165_v31 = vld [vmem:[%s1772_s4 + $0x70] sm:$0xff]  ;;  %s1333_s3 = smov 96   ;;  %v510_v12 = vsub.s32 2, %v1518_v0 }
   0x9   :  { %1236 = vmatprep.subr.bf16.mxu0 %v1330_v3  ;;  %v1231_v29 = vpack.c.bf16 %v164_v28, %v163_v27  ;;  %v166_v32 = vld [vmem:[%s1772_s4 + $0x78] sm:$0xff]  ;;  %v251_v47 = vld [vmem:[%s1774_s6] sm:$0xff]  ;;  %v252_v48 = vld [vmem:[%s1774_s6 + $0x8] sm:$0xff]  ;;  %v522_v16 = vsub.s32 3, %v1518_v0  ;;  %v534_v18 = vsub.s32 4, %v1518_v0  ;;  %v558_v24 = vsub.s32 6, %v1518_v0 }
   0xa   :  { %v1234_v33 = vpack.c.bf16 %v166_v32, %v165_v31  ;;  %v1237_v49 = vpack.c.bf16 %v252_v48, %v251_v47  ;;  %v253_v50 = vld [vmem:[%s1774_s6 + $0x10] sm:$0xff]  ;;  %v254_v51 = vld [vmem:[%s1774_s6 + $0x18] sm:$0xff]  ;;  %v1083_v53 = vld [vmem:[%s1773_s5] ss:$0 sm:$0xff]  ;;  %vm881_vm9 = vcmask 1045504   ;;  %vm883_vm10 = vcmask 1046528  }
   0xb   :  { %1136 = vmatmul.mubr.msk.f32.vlgmr.msra.gmra.mrb[0].mxu0 %vm54_vm0, %v42_v8  ;;  %1217 = vmatpush3.bf16.msra.mxu1 %v1216_v14  ;;  %v1240_v52 = vpack.c.bf16 %v254_v51, %v253_v50  ;;  %v1084_v1 = vld [vmem:[%s1775_s7] ss:$0 sm:$0xff] }
   0xc   :  { %1181 = vmatprep.mubr.msk.f32.mxu0 %vm1331_vm1, %v1332_v6  ;;  %1218 = vmatprep.subr.bf16.mxu1 %v1330_v3 }
   0xd   :  { %1238 = vmatpush3.bf16.msra.mxu0 %v1237_v49 }
   0xe   :  { %1239 = vmatprep.subr.bf16.mxu0 %v1330_v3 }
   0xf   :  { %1220 = vmatpush3.bf16.msra.mxu1 %v1219_v17 }
  0x10   :  { %1221 = vmatprep.subr.bf16.mxu1 %v1330_v3 }
  0x11   :  { %1241 = vmatpush3.bf16.msra.mxu0 %v1240_v52 }
  0x12   :  { %1242 = vmatprep.subr.bf16.mxu0 %v1330_v3 }
  0x13   :  { %1223 = vmatpush3.bf16.msra.mxu1 %v1222_v20  ;;  %v546_v20 = vsub.s32 5, %v1518_v0 }
  0x14   :  { %1224 = vmatprep.subr.bf16.mxu1 %v1330_v3 }
  0x17   :  { %1226 = vmatpush3.bf16.msra.mxu1 %v1225_v23 }
  0x18   :  { %1227 = vmatprep.subr.bf16.mxu1 %v1330_v3 }
  0x1b   :  { %1229 = vmatpush3.bf16.msra.mxu1 %v1228_v26  ;;  %v1336_v26 = vmov 1966171168  }
  0x1c   :  { %1230 = vmatprep.subr.bf16.mxu1 %v1330_v3  ;;  %v349_v27 = vunpack.c.l.s4 %v1336_v26 }
  0x1f   :  { %1232 = vmatpush3.bf16.msra.mxu1 %v1231_v29  ;;  %v350_v29 = vunpack.c.0.s8 %v349_v27 }
  0x20   :  { %1233 = vmatprep.subr.bf16.mxu1 %v1330_v3 }
  0x21   :  { %v353_v32 = vsub.s32 %v350_v29, %v1518_v0 }
  0x23   :  { %1235 = vmatpush3.bf16.msra.mxu1 %v1234_v33 }
  0xde   :  { %v124_v34 = vpop.f32.mrb[0].mxu0 }
  0xdf   :  { %v1489_v35 = vadd.f32 %v1081_v30, %v124_v34  ;;  %v1137_v36 = vpop.f32.mrb[1].mxu0 }
  0xe1   :  { %129 = vst.msk [vmem:[#allocation2 + $0x8] sm:$0xff] %vm54_vm0, %v1489_v35  ;;  %v970_v28 = vsub.f32 0.0, %v1489_v35 }
  0xe3   :  { %v971_v30 = vmul.f32 1.442695, %v970_v28  ;;  %v886_v28 = vld [vmem:[%s1769_s1 + $0x8] sm:$0xff] }
  0xe8   :  { %v133_v37 = vld [vmem:[#allocation2 + $0x8] sm:$0xff] }
  0xe9   :  { %v131_v38 = vld [vmem:[#allocation2 + $0x6] sm:$0xff]  ;;  %143 = vrot.lane.b32.xlu1 %v133_v37, %s1333_s3  ;;  %v570_v37 = vsub.s32 7, %v1518_v0 }
  0xea   :  { %135 = vrot.lane.b32.xlu0 %v131_v38, %s1334_s25  ;;  %v132_v39 = vld [vmem:[#allocation2 + $0x7] sm:$0xff] }
  0xeb   :  { %v130_v41 = vld [vmem:[#allocation2 + $0x5] sm:$0xff] }
  0xee   :  { %139 = vrot.lane.b32.xlu0 %v132_v39, %s1335_s26 }
 0x15b   :  { %v144_v44 = vpop.permute.xlu1 %143 }
 0x15c   :  { %v136_v40 = vpop.permute.xlu0 %135 }
 0x15d   :  { %v146_v42 = vsel %vm54_vm0, %v130_v41, %v136_v40 }
 0x160   :  { %v140_v43 = vpop.permute.xlu0 %139 }
 0x161   :  { %v148_v45 = vsel %vm147_vm2, %v146_v42, %v140_v43 }
 0x162   :  { %v150_v46 = vsel %vm149_vm3, %v148_v45, %v144_v44 }
 0x163   :  { %1171 = vmatmul.mubr.f32.vlgmr.msra.gmra.mrb[0].mxu1 %v150_v46 }
 0x236   :  { %v240_v54 = vpop.f32.mrb[0].mxu1 }
 0x237   :  { %v241_v55 = vadd.f32 %v1083_v53, %v240_v54  ;;  %v1172_v56 = vpop.f32.mrb[1].mxu1 }
 0x239   :  { %v244_v57 = vsub.f32 0.0, %v241_v55 }
 0x23b   :  { %v245_v58 = vmul.f32 1.442695, %v244_v57 }
 0x23d   :  { %1262 = vpow2.f32 %v245_v58 }
 0x247   :  { %v1263_v59 = vpop.eup %1262 }
 0x248   :  { %v247_v60 = vadd.f32 1.0, %v1263_v59 }
 0x24a   :  { %1264 = vrcp.f32 %v247_v60 }
 0x254   :  { %v1265_v61 = vpop.eup %1264 }
 0x255   :  { %v1512_v62 = vmul.f32 %v1265_v61, %v241_v55 }
 0x257   :  { %1182 = vmatmul.mubr.msk.f32.vlgmr.msra.gmra.mrb[2].mxu0 %vm54_vm0, %v1512_v62 }
 0x258   :  { %1192 = vmatprep.mubr.msk.f32.mxu0 %vm1331_vm1, %v1332_v6 }
 0x32a   :  { %v331_v4 = vpop.f32.mrb[2].mxu0 }
 0x32b   :  { %v332_v5 = vadd.f32 %v1084_v1, %v331_v4  ;;  %v1183_v7 = vpop.f32.mrb[3].mxu0 }
 0x32d   :  { %v487_v8 = vrot.slane %v332_v5, %v1524_v2  ;;  %v336_v10 = vand.u32 2147483647, %v332_v5  ;;  %v499_v11 = vrot.slane %v332_v5, %v498_v9  ;;  %v511_v15 = vrot.slane %v332_v5, %v510_v12 }
 0x32e   :  { %v1530_v17 = vrot.slane %v332_v5, %v522_v16  ;;  %v1535_v19 = vrot.slane %v332_v5, %v534_v18  ;;  %v1540_v23 = vrot.slane %v332_v5, %v546_v20  ;;  %v1545_v25 = vrot.slane %v332_v5, %v558_v24 }
 0x32f   :  { %494 = vbcast.lane.b32.xlu0 %v487_v8, 296  ;;  %490 = vbcast.lane.b32.xlu1 %v487_v8, 288  ;;  %v337_v13 = vsub.f32 0.0, %v336_v10  ;;  %v335_v33 = vmax.f32 %v332_v5, 0.0  ;;  %v571_v44 = vrot.slane %v332_v5, %v570_v37 }
 0x331   :  { %v338_v14 = vmul.f32 1.442695, %v337_v13 }
 0x333   :  { %506 = vbcast.lane.b32.xlu0 %v499_v11, 296  ;;  %502 = vbcast.lane.b32.xlu1 %v499_v11, 288  ;;  %1266 = vpow2.f32 %v338_v14 }
 0x337   :  { %518 = vbcast.lane.b32.xlu0 %v511_v15, 296  ;;  %514 = vbcast.lane.b32.xlu1 %v511_v15, 288 }
 0x33b   :  { %530 = vbcast.lane.b32.xlu0 %v1530_v17, 296  ;;  %526 = vbcast.lane.b32.xlu1 %v1530_v17, 288 }
 0x33d   :  { %v1267_v21 = vpop.eup %1266 }
 0x33e   :  { %v340_v22 = vadd.f32 1.0, %v1267_v21 }
 0x33f   :  { %542 = vbcast.lane.b32.xlu0 %v1535_v19, 296  ;;  %538 = vbcast.lane.b32.xlu1 %v1535_v19, 288 }
 0x340   :  { %1268 = vlog2.f32 %v340_v22 }
 0x341   :  { %1270 = vpow2.f32 %v971_v30  ;;  %v1616_v30 = vld [vmem:[%s1776_s8 + $0x8] sm:$0xff] }
 0x343   :  { %554 = vbcast.lane.b32.xlu0 %v1540_v23, 296  ;;  %550 = vbcast.lane.b32.xlu1 %v1540_v23, 288 }
 0x347   :  { %566 = vbcast.lane.b32.xlu0 %v1545_v25, 296  ;;  %562 = vbcast.lane.b32.xlu1 %v1545_v25, 288 }
 0x34a   :  { %v1269_v31 = vpop.eup %1268 }
 0x34b   :  { %693 = vbcast.lane.b32.xlu0 %v487_v8, 312  ;;  %689 = vbcast.lane.b32.xlu1 %v487_v8, 304  ;;  %v342_v34 = vmul.f32 0.6931472, %v1269_v31  ;;  %v1271_v60 = vpop.eup %1270  ;;  %v1621_v31 = vld [vmem:[%s1776_s8] sm:$0xff] }
 0x34c   :  { %v973_v10 = vadd.f32 1.0, %v1271_v60 }
 0x34d   :  { %v343_v36 = vadd.f32 %v342_v34, %v335_v33 }
 0x34e   :  { %1272 = vrcp.f32 %v973_v10 }
 0x34f   :  { %701 = vbcast.lane.b32.xlu0 %v499_v11, 312  ;;  %697 = vbcast.lane.b32.xlu1 %v499_v11, 304  ;;  %v580_v38 = vmul.f32 %v343_v36, %v1512_v62  ;;  %v354_v39 = vrot.slane %v343_v36, %v353_v32  ;;  %v347_v40 = vcombine.high %v343_v36, %v343_v36 }
 0x351   :  { %v589_v41 = vrot.slane %v580_v38, %v353_v32  ;;  %v582_v42 = vcombine.high %v580_v38, %v580_v38  ;;  %v362_v43 = vcombine.high %v354_v39, %v354_v39  ;;  %v370_v45 = vrot.slane %v354_v39, %v353_v32 }
 0x352   :  { %v361_v46 = vrot.slane %v347_v40, %v353_v32 }
 0x353   :  { %709 = vbcast.lane.b32.xlu0 %v511_v15, 312  ;;  %705 = vbcast.lane.b32.xlu1 %v511_v15, 304  ;;  %v605_v47 = vrot.slane %v589_v41, %v353_v32  ;;  %v597_v48 = vcombine.high %v589_v41, %v589_v41  ;;  %v596_v49 = vrot.slane %v582_v42, %v353_v32 }
 0x354   :  { %v384_v50 = vrot.slane %v362_v43, %v353_v32  ;;  %v392_v51 = vcombine.high %v370_v45, %v370_v45  ;;  %v399_v52 = vrot.slane %v370_v45, %v1524_v2  ;;  %v377_v53 = vrot.slane %v361_v46, %v353_v32 }
 0x355   :  { %v1555_v54 = vrot.slane %v605_v47, %v1524_v2  ;;  %v619_v55 = vrot.slane %v597_v48, %v353_v32  ;;  %v627_v56 = vcombine.high %v605_v47, %v605_v47  ;;  %v612_v57 = vrot.slane %v596_v49, %v353_v32 }
 0x356   :  { %v598_v58 = vcombine.high %v596_v49, %v596_v49  ;;  %v407_v59 = vrot.slane %v392_v51, %v1524_v2  ;;  %v394_v7 = vcombine.high %v384_v50, %v384_v50  ;;  %v403_v9 = vrot.slane %v384_v50, %v1524_v2 }
 0x357   :  { %578 = vbcast.lane.b32.xlu0 %v571_v44, 296  ;;  %574 = vbcast.lane.b32.xlu1 %v571_v44, 288  ;;  %v1559_v61 = vrot.slane %v619_v55, %v1524_v2  ;;  %v1562_v63 = vrot.slane %v627_v56, %v1524_v2  ;;  %v629_v0 = vcombine.high %v619_v55, %v619_v55 }
 0x358   :  { %v1565_v1 = vrot.slane %v612_v57, %v1524_v2  ;;  %v626_v4 = vrot.slane %v598_v58, %v353_v32  ;;  %v628_v5 = vcombine.high %v612_v57, %v612_v57  ;;  %v363_v13 = vcombine.high %v361_v46, %v361_v46  ;;  %v1273_v26 = vpop.eup %1272 }
 0x359   :  { %v1570_v8 = vrot.slane %v629_v0, %v1524_v2  ;;  %v411_v15 = vrot.slane %v394_v7, %v1524_v2  ;;  %v415_v16 = vrot.slane %v377_v53, %v1524_v2  ;;  %v393_v20 = vcombine.high %v377_v53, %v377_v53 }
 0x35a   :  { %v1574_v11 = vrot.slane %v626_v4, %v1524_v2  ;;  %v1577_v12 = vrot.slane %v628_v5, %v1524_v2  ;;  %v630_v14 = vcombine.high %v626_v4, %v626_v4  ;;  %v391_v18 = vrot.slane %v363_v13, %v353_v32 }
 0x35b   :  { %717 = vbcast.lane.b32.xlu0 %v1530_v17, 312  ;;  %713 = vbcast.lane.b32.xlu1 %v1530_v17, 304  ;;  %v1590_v24 = vrot.slane %v393_v20, %v1524_v2  ;;  %v976_v27 = vmul.f32 %v1273_v26, %v1489_v35  ;;  %v437_v32 = vmul.f32 %v399_v52, %v1616_v30 }
 0x35c   :  { %v1584_v17 = vrot.slane %v630_v14, %v1524_v2  ;;  %v419_v21 = vrot.slane %v391_v18, %v1524_v2  ;;  %v395_v22 = vcombine.high %v391_v18, %v391_v18  ;;  %v436_v33 = vmul.f32 %v399_v52, %v1621_v31 }
 0x35d   :  { %v454_v34 = vmul.f32 1.442695, %v437_v32  ;;  %v439_v37 = vmul.f32 %v403_v9, %v1616_v30  ;;  %v438_v38 = vmul.f32 %v403_v9, %v1621_v31  ;;  %v441_v40 = vmul.f32 %v407_v59, %v1616_v30 }
 0x35e   :  { %v452_v36 = vmul.f32 1.442695, %v436_v33  ;;  %v440_v42 = vmul.f32 %v407_v59, %v1621_v31  ;;  %v443_v43 = vmul.f32 %v411_v15, %v1616_v30  ;;  %v442_v46 = vmul.f32 %v411_v15, %v1621_v31 }
 0x35f   :  { %725 = vbcast.lane.b32.xlu0 %v1535_v19, 312  ;;  %721 = vbcast.lane.b32.xlu1 %v1535_v19, 304  ;;  %v1593_v19 = vrot.slane %v395_v22, %v1524_v2  ;;  %v887_v2 = vld [vmem:[%s1769_s1 + $0x10] sm:$0xff]  ;;  %1274 = vpow2.f32 %v454_v34  ;;  %v458_v39 = vmul.f32 1.442695, %v439_v37  ;;  %v445_v48 = vmul.f32 %v415_v16, %v1616_v30 }
 0x360   :  { %1276 = vpow2.f32 %v452_v36  ;;  %v456_v41 = vmul.f32 1.442695, %v438_v38  ;;  %v460_v45 = vmul.f32 1.442695, %v440_v42  ;;  %v466_v47 = vmul.f32 1.442695, %v443_v43 }
 0x361   :  { %1278 = vpow2.f32 %v458_v39  ;;  %v464_v51 = vmul.f32 1.442695, %v442_v46  ;;  %v444_v52 = vmul.f32 %v415_v16, %v1621_v31  ;;  %v470_v56 = vmul.f32 1.442695, %v445_v48 }
 0x362   :  { %1280 = vpow2.f32 %v456_v41  ;;  %v447_v57 = vmul.f32 %v419_v21, %v1616_v30  ;;  %v446_v5 = vmul.f32 %v419_v21, %v1621_v31  ;;  %v449_v18 = vmul.f32 %v1590_v24, %v1616_v30 }
 0x363   :  { %733 = vbcast.lane.b32.xlu0 %v1540_v23, 312  ;;  %729 = vbcast.lane.b32.xlu1 %v1540_v23, 304  ;;  %v885_v23 = vld [vmem:[%s1769_s1] sm:$0xff]  ;;  %v468_v4 = vmul.f32 1.442695, %v444_v52  ;;  %v450_v39 = vmul.f32 %v1593_v19, %v1621_v31 }
 0x364   :  { %v1243_v29 = vpack.c.bf16 %v886_v28, %v885_v23  ;;  %v474_v16 = vmul.f32 1.442695, %v447_v57  ;;  %v472_v26 = vmul.f32 1.442695, %v446_v5  ;;  %v478_v32 = vmul.f32 1.442695, %v449_v18 }
 0x366   :  { %1244 = vmatpush3.bf16.msra.mxu0 %v1243_v29 }
 0x367   :  { %741 = vbcast.lane.b32.xlu0 %v1545_v25, 312  ;;  %737 = vbcast.lane.b32.xlu1 %v1545_v25, 304  ;;  %v888_v25 = vld [vmem:[%s1769_s1 + $0x18] sm:$0xff] }
 0x368   :  { %v1246_v35 = vpack.c.bf16 %v888_v25, %v887_v2  ;;  %1245 = vmatprep.subr.bf16.mxu0 %v1330_v3 }
 0x369   :  { %v1275_v49 = vpop.eup %1274 }
 0x36a   :  { %1247 = vmatpush3.bf16.msra.mxu0 %v1246_v35  ;;  %v1277_v50 = vpop.eup %1276  ;;  %v752_v60 = vmul.f32 0.0, %v1275_v49 }
 0x36b   :  { %749 = vbcast.lane.b32.xlu0 %v571_v44, 312  ;;  %745 = vbcast.lane.b32.xlu1 %v571_v44, 304  ;;  %v462_v44 = vmul.f32 1.442695, %v441_v40  ;;  %v751_v0 = vmul.f32 0.0, %v1277_v50  ;;  %v1279_v7 = vpop.eup %1278 }
 0x36c   :  { %1248 = vmatprep.subr.bf16.mxu0 %v1330_v3  ;;  %v1281_v13 = vpop.eup %1280 }
 0x36d   :  { %1282 = vpow2.f32 %v462_v44 }
 0x36e   :  { %1284 = vpow2.f32 %v460_v45 }
 0x36f   :  { %978 = vrot.lane.b32.xlu1 %v976_v27, %s1333_s3  ;;  %1286 = vpow2.f32 %v466_v47  ;;  %v448_v27 = vmul.f32 %v1590_v24, %v1621_v31 }
 0x370   :  { %1288 = vpow2.f32 %v464_v51 }
 0x371   :  { %1290 = vpow2.f32 %v470_v56  ;;  %v476_v38 = vmul.f32 1.442695, %v448_v27 }
 0x372   :  { %1292 = vpow2.f32 %v468_v4 }
 0x373   :  { %1294 = vpow2.f32 %v474_v16 }
 0x374   :  { %1296 = vpow2.f32 %v472_v26 }
 0x375   :  { %1298 = vpow2.f32 %v478_v32 }
 0x376   :  { %1300 = vpow2.f32 %v476_v38 }
 0x377   :  { %v1283_v23 = vpop.eup %1282 }
 0x378   :  { %v1285_v29 = vpop.eup %1284 }
 0x379   :  { %v1287_v37 = vpop.eup %1286 }
 0x37a   :  { %v1289_v42 = vpop.eup %1288 }
 0x37b   :  { %v1291_v48 = vpop.eup %1290 }
 0x37c   :  { %v1293_v50 = vpop.eup %1292 }
 0x37d   :  { %v1295_v57 = vpop.eup %1294 }
 0x3a1   :  { %v495_v53 = vpop.permute.xlu0 %494  ;;  %v491_v55 = vpop.permute.xlu1 %490 }
 0x3a2   :  { %v672_v58 = vmul.f32 %v1555_v54, %v495_v53  ;;  %v671_v59 = vmul.f32 %v1555_v54, %v491_v55 }
 0x3a4   :  { %v1637_v9 = vadd.f32 %v752_v60, %v672_v58  ;;  %v1639_v10 = vadd.f32 %v751_v0, %v671_v59  ;;  %v1297_v60 = vpop.eup %1296 }
 0x3a5   :  { %v507_v14 = vpop.permute.xlu0 %506  ;;  %v503_v15 = vpop.permute.xlu1 %502 }
 0x3a6   :  { %v674_v54 = vmul.f32 %v1559_v61, %v507_v14  ;;  %v673_v20 = vmul.f32 %v1559_v61, %v503_v15  ;;  %v767_v22 = vmul.f32 %v1279_v7, %v1637_v9  ;;  %v766_v21 = vmul.f32 %v1281_v13, %v1639_v10  ;;  %v1299_v14 = vpop.eup %1298 }
 0x3a7   :  { %v451_v61 = vmul.f32 %v1593_v19, %v1616_v30  ;;  %v480_v19 = vmul.f32 1.442695, %v450_v39  ;;  %v1301_v18 = vpop.eup %1300 }
 0x3a8   :  { %v1649_v28 = vadd.f32 %v767_v22, %v674_v54  ;;  %v1651_v2 = vadd.f32 %v766_v21, %v673_v20 }
 0x3a9   :  { %v519_v25 = vpop.permute.xlu0 %518  ;;  %v515_v35 = vpop.permute.xlu1 %514  ;;  %v482_v44 = vmul.f32 1.442695, %v451_v61 }
 0x3aa   :  { %v676_v33 = vmul.f32 %v1562_v63, %v519_v25  ;;  %v675_v34 = vmul.f32 %v1562_v63, %v515_v35  ;;  %v782_v36 = vmul.f32 %v1283_v23, %v1649_v28  ;;  %v781_v24 = vmul.f32 %v1285_v29, %v1651_v2 }
 0x3ab   :  { %1302 = vpow2.f32 %v482_v44 }
 0x3ac   :  { %v1661_v40 = vadd.f32 %v782_v36, %v676_v33  ;;  %v1663_v41 = vadd.f32 %v781_v24, %v675_v34  ;;  %1304 = vpow2.f32 %v480_v19 }
 0x3ad   :  { %v531_v30 = vpop.permute.xlu0 %530  ;;  %v527_v43 = vpop.permute.xlu1 %526 }
 0x3ae   :  { %v678_v63 = vmul.f32 %v1570_v8, %v531_v30  ;;  %v677_v45 = vmul.f32 %v1570_v8, %v527_v43  ;;  %v797_v46 = vmul.f32 %v1287_v37, %v1661_v40  ;;  %v796_v47 = vmul.f32 %v1289_v42, %v1663_v41 }
 0x3b0   :  { %v1669_v31 = vadd.f32 %v797_v46, %v678_v63  ;;  %v1671_v49 = vadd.f32 %v796_v47, %v677_v45 }
 0x3b1   :  { %v543_v51 = vpop.permute.xlu0 %542  ;;  %v539_v52 = vpop.permute.xlu1 %538 }
 0x3b2   :  { %v680_v53 = vmul.f32 %v1565_v1, %v543_v51  ;;  %v679_v55 = vmul.f32 %v1565_v1, %v539_v52  ;;  %v812_v8 = vmul.f32 %v1291_v48, %v1669_v31  ;;  %v811_v56 = vmul.f32 %v1293_v50, %v1671_v49 }
 0x3b4   :  { %v1677_v58 = vadd.f32 %v812_v8, %v680_v53  ;;  %v1679_v59 = vadd.f32 %v811_v56, %v679_v55 }
 0x3b5   :  { %v555_v0 = vpop.permute.xlu0 %554  ;;  %v551_v4 = vpop.permute.xlu1 %550 }
 0x3b6   :  { %v682_v5 = vmul.f32 %v1574_v11, %v555_v0  ;;  %v681_v7 = vmul.f32 %v1574_v11, %v551_v4  ;;  %v827_v13 = vmul.f32 %v1295_v57, %v1677_v58  ;;  %v826_v1 = vmul.f32 %v1297_v60, %v1679_v59  ;;  %v1303_v27 = vpop.eup %1302 }
 0x3b7   :  { %v1305_v25 = vpop.eup %1304 }
 0x3b8   :  { %v1685_v15 = vadd.f32 %v827_v13, %v682_v5  ;;  %v1687_v16 = vadd.f32 %v826_v1, %v681_v7 }
 0x3b9   :  { %v567_v54 = vpop.permute.xlu0 %566  ;;  %v563_v20 = vpop.permute.xlu1 %562 }
 0x3ba   :  { %v684_v22 = vmul.f32 %v1577_v12, %v567_v54  ;;  %v683_v21 = vmul.f32 %v1577_v12, %v563_v20  ;;  %v842_v26 = vmul.f32 %v1299_v14, %v1685_v15  ;;  %v841_v11 = vmul.f32 %v1301_v18, %v1687_v16 }
 0x3bc   :  { %v1693_v23 = vadd.f32 %v842_v26, %v684_v22  ;;  %v1695_v29 = vadd.f32 %v841_v11, %v683_v21 }
 0x3bd   :  { %v694_v35 = vpop.permute.xlu0 %693  ;;  %v690_v32 = vpop.permute.xlu1 %689 }
 0x3be   :  { %v756_v61 = vmul.f32 %v1637_v9, %v694_v35  ;;  %v755_v33 = vmul.f32 %v1639_v10, %v690_v32  ;;  %v857_v34 = vmul.f32 %v1303_v27, %v1693_v23  ;;  %v856_v12 = vmul.f32 %v1305_v25, %v1695_v29 }
 0x3c0   :  { %v758_v36 = vsel %vm54_vm0, %v756_v61, 0.0  ;;  %v757_v24 = vsel %vm54_vm0, %v755_v33, 0.0 }
 0x3c1   :  { %v759_v37 = vadd.f32 %v758_v36, %v757_v24  ;;  %v702_v38 = vpop.permute.xlu0 %701  ;;  %v698_v39 = vpop.permute.xlu1 %697 }
 0x3c2   :  { %v771_v42 = vmul.f32 %v1649_v28, %v702_v38  ;;  %v770_v30 = vmul.f32 %v1651_v2, %v698_v39 }
 0x3c3   :  { %v760_v43 = vrot.slane %v759_v37, 4 }
 0x3c4   :  { %v773_v9 = vsel %vm54_vm0, %v771_v42, 0.0  ;;  %v772_v10 = vsel %vm54_vm0, %v770_v30, 0.0 }
 0x3c5   :  { %v761_v44 = vadd.f32 %v760_v43, %v759_v37  ;;  %v774_v63 = vadd.f32 %v773_v9, %v772_v10  ;;  %v710_v45 = vpop.permute.xlu0 %709  ;;  %v706_v46 = vpop.permute.xlu1 %705 }
 0x3c6   :  { %v786_v47 = vmul.f32 %v1661_v40, %v710_v45  ;;  %v785_v48 = vmul.f32 %v1663_v41, %v706_v46 }
 0x3c7   :  { %v762_v19 = vrot.slane %v761_v44, 2  ;;  %v775_v50 = vrot.slane %v774_v63, 4 }
 0x3c8   :  { %v788_v51 = vsel %vm54_vm0, %v786_v47, 0.0  ;;  %v787_v28 = vsel %vm54_vm0, %v785_v48, 0.0 }
 0x3c9   :  { %v763_v2 = vadd.f32 %v762_v19, %v761_v44  ;;  %v776_v52 = vadd.f32 %v775_v50, %v774_v63  ;;  %v789_v53 = vadd.f32 %v788_v51, %v787_v28  ;;  %v579_v55 = vpop.permute.xlu0 %578  ;;  %v575_v8 = vpop.permute.xlu1 %574 }
 0x3ca   :  { %v686_v56 = vmul.f32 %v1584_v17, %v579_v55  ;;  %v685_v57 = vmul.f32 %v1584_v17, %v575_v8 }
 0x3cb   :  { %v777_v60 = vrot.slane %v776_v52, 2  ;;  %v790_v0 = vrot.slane %v789_v53, 4  ;;  %v764_v41 = vrot.slane %v763_v2, 1 }
 0x3cc   :  { %v859_v40 = vadd.f32 %v857_v34, %v686_v56  ;;  %v858_v4 = vadd.f32 %v856_v12, %v685_v57 }
 0x3cd   :  { %v778_v5 = vadd.f32 %v777_v60, %v776_v52  ;;  %v791_v7 = vadd.f32 %v790_v0, %v789_v53  ;;  %v718_v13 = vpop.permute.xlu0 %717  ;;  %v714_v1 = vpop.permute.xlu1 %713  ;;  %v765_v21 = vadd.f32 %v764_v41, %v763_v2 }
 0x3ce   :  { %v801_v14 = vmul.f32 %v1669_v31, %v718_v13  ;;  %v800_v18 = vmul.f32 %v1671_v49, %v714_v1 }
 0x3cf   :  { %v779_v54 = vrot.slane %v778_v5, 1  ;;  %v792_v20 = vrot.slane %v791_v7, 2 }
 0x3d0   :  { %v803_v22 = vsel %vm54_vm0, %v801_v14, 0.0  ;;  %v802_v17 = vsel %vm54_vm0, %v800_v18, 0.0 }
 0x3d1   :  { %v780_v26 = vadd.f32 %v779_v54, %v778_v5  ;;  %v793_v11 = vadd.f32 %v792_v20, %v791_v7  ;;  %v804_v27 = vadd.f32 %v803_v22, %v802_v17  ;;  %v726_v25 = vpop.permute.xlu0 %725  ;;  %v722_v35 = vpop.permute.xlu1 %721 }
 0x3d2   :  { %v816_v32 = vmul.f32 %v1677_v58, %v726_v25  ;;  %v815_v61 = vmul.f32 %v1679_v59, %v722_v35 }
 0x3d3   :  { %v872_v31 = vsel %vm871_vm4, %v765_v21, %v780_v26  ;;  %v794_v33 = vrot.slane %v793_v11, 1  ;;  %v805_v49 = vrot.slane %v804_v27, 4 }
 0x3d4   :  { %v818_v34 = vsel %vm54_vm0, %v816_v32, 0.0  ;;  %v817_v12 = vsel %vm54_vm0, %v815_v61, 0.0  ;;  %v982_v32 = vld [vmem:[%s1778_s10] sm:$0xff]  ;;  %v983_v61 = vld [vmem:[%s1778_s10 + $0x8] sm:$0xff] }
 0x3d5   :  { %v795_v36 = vadd.f32 %v794_v33, %v793_v11  ;;  %v806_v24 = vadd.f32 %v805_v49, %v804_v27  ;;  %v819_v37 = vadd.f32 %v818_v34, %v817_v12  ;;  %v734_v38 = vpop.permute.xlu0 %733  ;;  %v730_v39 = vpop.permute.xlu1 %729  ;;  %v1249_v34 = vpack.c.bf16 %v983_v61, %v982_v32 }
 0x3d6   :  { %v831_v42 = vmul.f32 %v1685_v15, %v734_v38  ;;  %v830_v30 = vmul.f32 %v1687_v16, %v730_v39  ;;  %v1086_v38 = vld [vmem:[%s1777_s9] ss:$0 sm:$0xff] }
 0x3d7   :  { %v874_v58 = vsel %vm873_vm5, %v872_v31, %v795_v36  ;;  %v807_v43 = vrot.slane %v806_v24, 2  ;;  %v820_v59 = vrot.slane %v819_v37, 4  ;;  %v984_v36 = vld [vmem:[%s1778_s10 + $0x10] sm:$0xff]  ;;  %v896_v39 = vmul.f32 %v1086_v38, %v1512_v62 }
 0x3d8   :  { %v833_v9 = vsel %vm54_vm0, %v831_v42, 0.0  ;;  %v832_v10 = vsel %vm54_vm0, %v830_v30, 0.0 }
 0x3d9   :  { %v808_v44 = vadd.f32 %v807_v43, %v806_v24  ;;  %v821_v63 = vadd.f32 %v820_v59, %v819_v37  ;;  %v834_v45 = vadd.f32 %v833_v9, %v832_v10  ;;  %v742_v46 = vpop.permute.xlu0 %741  ;;  %v738_v47 = vpop.permute.xlu1 %737  ;;  %v985_v24 = vld [vmem:[%s1778_s10 + $0x18] sm:$0xff]  ;;  %v1088_v43 = vld [vmem:[%s1779_s11] ss:$0 sm:$0xff]  ;;  %s1337_s10 = smov [#allocation3]  }
 0x3da   :  { %v846_v48 = vmul.f32 %v1693_v23, %v742_v46  ;;  %v845_v19 = vmul.f32 %v1695_v29, %v738_v47  ;;  %v1252_v37 = vpack.c.bf16 %v985_v24, %v984_v36  ;;  %s1073_s16 = sshll.u32 %s1337_s10, 4  ;;  %s1074_s16 = int_to_ptr.vmem [resolvable:$true] %s1073_s16 }
 0x3db   :  { %v809_v50 = vrot.slane %v808_v44, 1  ;;  %v822_v15 = vrot.slane %v821_v63, 2  ;;  %v835_v51 = vrot.slane %v834_v45, 4  ;;  %s1306_s9 = scalar_lea.vmem %s1074_s16, 128  ;;  %p1311_p1 = scmp.lt.s32.totalorder %s1074_s16, %s1074_s16 }
 0x3dc   :  { %v848_v16 = vsel %vm54_vm0, %v846_v48, 0.0  ;;  %v847_v28 = vsel %vm54_vm0, %v845_v19, 0.0  ;;  %p1307_p0 = scmp.ne.s32.totalorder %s1074_s16, %s1306_s9  ;;  %p1312_p2 = scmp.lt.s32.totalorder %s1306_s9, %s1306_s9 }
 0x3dd   :  { %v810_v2 = vadd.f32 %v809_v50, %v808_v44  ;;  %v823_v52 = vadd.f32 %v822_v15, %v821_v63  ;;  %v836_v53 = vadd.f32 %v835_v51, %v834_v45  ;;  %v849_v55 = vadd.f32 %v848_v16, %v847_v28  ;;  %v750_v8 = vpop.permute.xlu0 %749  ;;  %v746_v56 = vpop.permute.xlu1 %745 }
 0x3de   :  { %v861_v57 = vmul.f32 %v859_v40, %v750_v8  ;;  %v860_v60 = vmul.f32 %v858_v4, %v746_v56  ;;  %p1313_p3 = por %p1312_p2, %p1311_p1 }
 0x3df   :  { %v876_v0 = vsel %vm875_vm6, %v874_v58, %v810_v2  ;;  %v824_v23 = vrot.slane %v823_v52, 1  ;;  %v837_v41 = vrot.slane %v836_v53, 2  ;;  %v850_v29 = vrot.slane %v849_v55, 4 }
 0x3e0   :  { %v863_v5 = vsel %vm54_vm0, %v861_v57, 0.0  ;;  %v862_v7 = vsel %vm54_vm0, %v860_v60, 0.0  ;;  %p1314_p4 = pnand %p1313_p3, %p1307_p0 }
 0x3e1   :  { %v825_v13 = vadd.f32 %v824_v23, %v823_v52  ;;  %v838_v1 = vadd.f32 %v837_v41, %v836_v53  ;;  %v851_v14 = vadd.f32 %v850_v29, %v849_v55  ;;  %v864_v18 = vadd.f32 %v863_v5, %v862_v7 }
 0x3e3   :  { %v839_v54 = vrot.slane %v838_v1, 1  ;;  %v852_v20 = vrot.slane %v851_v14, 2  ;;  %v865_v22 = vrot.slane %v864_v18, 4  ;;  %v878_v17 = vsel %vm877_vm7, %v876_v0, %v825_v13 }
 0x3e5   :  { %v840_v40 = vadd.f32 %v839_v54, %v838_v1  ;;  %v853_v4 = vadd.f32 %v852_v20, %v851_v14  ;;  %v866_v21 = vadd.f32 %v865_v22, %v864_v18 }
 0x3e7   :  { %v854_v26 = vrot.slane %v853_v4, 1  ;;  %v867_v11 = vrot.slane %v866_v21, 2  ;;  %v880_v27 = vsel %vm879_vm8, %v878_v17, %v840_v40 }
 0x3e9   :  { %v855_v25 = vadd.f32 %v854_v26, %v853_v4  ;;  %v868_v35 = vadd.f32 %v867_v11, %v866_v21 }
 0x3eb   :  { %v869_v31 = vrot.slane %v868_v35, 1  ;;  %v882_v33 = vsel %vm881_vm9, %v880_v27, %v855_v25 }
 0x3ed   :  { %v870_v49 = vadd.f32 %v869_v31, %v868_v35 }
 0x3ef   :  { %v884_v12 = vsel %vm883_vm10, %v882_v33, %v870_v49 }
 0x3f0   :  { %1193 = vmatmul.mubr.msk.f32.vlgmr.msra.gmra.mrb[4].mxu0 %vm54_vm0, %v884_v12 }
 0x3f1   :  { %1250 = vmatpush3.bf16.msra.mxu0 %v1249_v34  ;;  %1203 = vmatprep.mubr.msk.f32.mxu0 %vm1331_vm1, %v1332_v6 }
 0x3f2   :  { %1251 = vmatprep.subr.bf16.mxu0 %v1330_v3  ;;  %v979_v3 = vpop.permute.xlu1 %978 }
 0x3f5   :  { %1253 = vmatpush3.bf16.msra.mxu0 %v1252_v37 }
 0x4c3   :  { %v966_v42 = vpop.f32.mrb[4].mxu0 }
 0x4c4   :  { %v967_v6 = vadd.f32 %v966_v42, %v896_v39  ;;  %v1194_v30 = vpop.f32.mrb[5].mxu0 }
 0x4c6   :  { %v981_v58 = vmul.f32 %v979_v3, %v967_v6 }
 0x4c8   :  { %1204 = vmatmul.mubr.msk.f32.vlgmr.msra.gmra.mrb[6].mxu0 %vm54_vm0, %v981_v58 }
 0x59b   :  { %v1062_v59 = vpop.f32.mrb[6].mxu0 }
 0x59c   :  { %v1063_v9 = vadd.f32 %v1088_v43, %v1062_v59  ;;  %v1205_v10 = vpop.f32.mrb[7].mxu0 }
 0x59e   :  { %1066 = vst.msk [vmem:[#allocation3] sm:$0xff] %vm54_vm0, %v1063_v9 }
 0x59f   :  { %1317 = shalt.err (!%p1314_p4)
}
 0x5a0   :  { %s1318_s7 = scalar_lea.hbm %s1780_s12, 128 }
 0x5a1   :  { %p1319_p5 = scmp.ne.s32.totalorder %s1780_s12, %s1318_s7  ;;  %p1322_p6 = scmp.lt.u32.totalorder %s1318_s7, %s1780_s12 }
 0x5a3   :  { %p1324_p7 = pnand %p1322_p6, %p1319_p5 }
 0x5a5   :  { %1327 = shalt.err (!%p1324_p7)
}
 0x5a6   :  { %1076 = dma.vmem_to_hbm [thread:$0]  %s1074_s16, 128, %s1780_s12, [#allocation4]  }
 0x5a7   :  { %1328 = dma.done.wait [#allocation4], 128  }
 0x5a8   :  { %1329 = vsyncadd [#allocation4], 4294967168 }
 0x5a9   :  { %1080 = vsyncpa [#allocation4], 1 }

</bundles_post_ra>
